<compile_context>
chip_gen: v7x
topology: tpu7x:2x2x1
jax: 0.10.0
libtpu: 0.0.40
codegen_flags: <defaults>
</compile_context>

<pallas_src>
import functools

import numpy as np
import jax
import jax.numpy as jnp
from jax import lax
from jax.experimental import pallas as pl
from jax.experimental.pallas import tpu as pltpu


_EPS = float(jnp.finfo(jnp.float32).eps)
_VMEM_LIMIT = 64 * 1024 * 1024   # within physical VMEM on v5e/v6e/v7x


def _pick_token_tile(S, EC, out_itemsize):
    """Token tile: multiple of 32 dividing S, sized so the double-buffered
    (tile, E*C) combine + int8 mask output blocks stay well inside VMEM."""
    budget = 24 * 1024 * 1024
    per_row = EC * (out_itemsize + 1) * 2          # combine + mask, double-buffered
    cap = max(32, budget // max(per_row, 1))
    for t in (512, 256, 128, 64, 32):
        if t <= cap and S % t == 0:
            return t
    return S                                        # small / awkward S: single tile


def _phase1_kernel(x_ref, w_ref, noise_ref,
                   meta_ref, counts1_ref, sumg_ref,
                   cnt2_ref):
    i = pl.program_id(0)

    @pl.when(i == 0)
    def _():
        counts1_ref[...] = jnp.zeros_like(counts1_ref)
        sumg_ref[...] = jnp.zeros_like(sumg_ref)
        cnt2_ref[...] = jnp.zeros_like(cnt2_ref)

    # gate logits: x @ W^T, contracting over D directly (no wrapper transpose,
    # no pre-upcast -- the MXU accumulates in f32 via preferred_element_type).
    logits = lax.dot_general(
        x_ref[...], w_ref[...],
        dimension_numbers=(((1,), (1,)), ((), ())),
        preferred_element_type=jnp.float32)                      # (T, E)
    T, E = logits.shape

    # softmax over experts; approx reciprocal runs on the EUP and its row-scale
    # cancels exactly in the final gate re-normalization.
    m = jnp.max(logits, axis=1, keepdims=True)
    ex = jnp.exp(logits - m)
    gates = ex * pl.reciprocal(jnp.sum(ex, axis=1, keepdims=True), approx=True)

    col = lax.broadcasted_iota(jnp.int32, (T, E), 1)

    # top-1 expert (first argmax, torch tie-breaking)
    gmax = jnp.max(gates, axis=1, keepdims=True)
    idx1 = jnp.min(jnp.where(gates == gmax, col, E), axis=1, keepdims=True)
    mask1 = (col == idx1).astype(jnp.float32)

    # top-2 on gumbel-noised logits with the top-1 expert masked out
    noisy = logits + noise_ref[...].astype(jnp.float32)
    masked = jnp.where(mask1 > 0.0, -1e30, noisy)
    lmax = jnp.max(masked, axis=1, keepdims=True)
    idx2 = jnp.min(jnp.where(masked == lmax, col, E), axis=1, keepdims=True)
    mask2 = (col == idx2).astype(jnp.float32)

    # token-axis cumsum = per-tile inclusive prefix sum (small tril matmul)
    # + carried per-expert counts from previous tiles (O(S*E) total).
    r = lax.broadcasted_iota(jnp.int32, (T, T), 0)
    c = lax.broadcasted_iota(jnp.int32, (T, T), 1)
    tril = (c <= r).astype(jnp.float32)
    csum1 = jnp.dot(tril, mask1, preferred_element_type=jnp.float32)
    csum2 = jnp.dot(tril, mask2, preferred_element_type=jnp.float32)

    carry1 = counts1_ref[...]                 # (1, E) counts before this tile
    carry2 = cnt2_ref[...]
    loc1 = csum1 + carry1 - 1.0               # (T, E)
    loc2 = csum2 + carry2 - 1.0               # still missing global sum(mask1)

    counts1_ref[...] = carry1 + jnp.sum(mask1, axis=0, keepdims=True)
    cnt2_ref[...] = carry2 + jnp.sum(mask2, axis=0, keepdims=True)
    sumg_ref[...] = sumg_ref[...] + jnp.sum(gates, axis=0, keepdims=True)

    # compact per-token record: [gate1, gate2, idx1, idx2, loc1, loc2_partial, 0, 0]
    g1 = jnp.sum(gates * mask1, axis=1, keepdims=True)
    g2 = jnp.sum(gates * mask2, axis=1, keepdims=True)
    l1 = jnp.sum(loc1 * mask1, axis=1, keepdims=True)
    l2 = jnp.sum(loc2 * mask2, axis=1, keepdims=True)
    mcol = lax.broadcasted_iota(jnp.int32, (T, meta_ref.shape[1]), 1)
    meta = (jnp.where(mcol == 0, g1, 0.0)
            + jnp.where(mcol == 1, g2, 0.0)
            + jnp.where(mcol == 2, idx1.astype(jnp.float32), 0.0)
            + jnp.where(mcol == 3, idx2.astype(jnp.float32), 0.0)
            + jnp.where(mcol == 4, l1, 0.0)
            + jnp.where(mcol == 5, l2, 0.0))
    meta_ref[...] = meta


def _phase2_kernel(capacity, num_experts, meta_ref, counts1_ref, comb_ref, disp_ref):
    T = meta_ref.shape[0]
    EC = comb_ref.shape[1]
    E = num_experts
    C = capacity

    meta = meta_ref[...]
    mcol = lax.broadcasted_iota(jnp.int32, meta.shape, 1)

    def column(j):  # robust single-column extraction (select + lane reduce)
        return jnp.sum(jnp.where(mcol == j, meta, 0.0), axis=1, keepdims=True)

    g1r = column(0)
    g2r = column(1)
    idx1 = column(2).astype(jnp.int32)
    idx2 = column(3).astype(jnp.int32)
    loc1 = column(4)
    loc2p = column(5)

    # locations2 += global per-expert count of top-1 assignments
    cnt1 = counts1_ref[...]                                   # (1, E)
    ecol = lax.broadcasted_iota(jnp.int32, (T, E), 1)
    off2 = jnp.sum(jnp.where(ecol == idx2, cnt1, 0.0), axis=1, keepdims=True)
    loc2 = loc2p + off2

    # capacity dropping + re-normalization of the two gate weights
    keep1 = (loc1 < float(C)).astype(jnp.float32)
    keep2 = (loc2 < float(C)).astype(jnp.float32)
    g1 = g1r * keep1
    g2 = g2r * keep2
    denom = jnp.maximum(g1 + g2, _EPS)
    g1 = g1 / denom
    g2 = g2 / denom

    loc1_i = loc1.astype(jnp.int32)
    loc2_i = loc2.astype(jnp.int32)

    # lane-dense flat (T, E*C) combine tensor; flat target column = e*C + c
    tgt1 = jnp.where(keep1 > 0.0, idx1 * C + loc1_i, -1)
    tgt2 = jnp.where(keep2 > 0.0, idx2 * C + loc2_i, -1)
    fcol = lax.broadcasted_iota(jnp.int32, (T, EC), 1)
    combine = jnp.where(fcol == tgt1, g1, 0.0) + jnp.where(fcol == tgt2, g2, 0.0)

    comb_ref[...] = combine.astype(comb_ref.dtype)
    # dispatch mask from the f32 values, stored as int8 (lane-dense store)
    # TODO(synk): emit jnp.bool_ directly once Mosaic bool stores are dependable.
    disp_ref[...] = (combine != 0.0).astype(jnp.int8)


def weight_top2gate_forward(x, weight, noise):
    """x: (S, D) tokens, weight: (E, D) gate weight, noise: (S, E) gumbel noise.

    Returns (l_aux, combine_weights, dispatch_mask) matching top2gating().
    """
    S, D = x.shape
    E = weight.shape[0]
    assert S % E == 0, "num_tokens must be divisible by num_experts"
    C = 2 * S // E
    EC = E * C
    out_dtype = x.dtype

    T = _pick_token_tile(S, EC, jnp.dtype(out_dtype).itemsize)
    n_tiles = S // T

    # ---- pass 1: routing + carried per-expert cumsum (serial over tokens) ----
    meta, counts1, sum_gates = pl.pallas_call(
        _phase1_kernel,
        out_shape=(
            jax.ShapeDtypeStruct((S, 8), jnp.float32),
            jax.ShapeDtypeStruct((1, E), jnp.float32),
            jax.ShapeDtypeStruct((1, E), jnp.float32),
        ),
        grid_spec=pltpu.PrefetchScalarGridSpec(
            num_scalar_prefetch=0,
            grid=(n_tiles,),
            in_specs=[
                pl.BlockSpec((T, D), lambda i: (i, 0)),
                pl.BlockSpec((E, D), lambda i: (0, 0)),
                pl.BlockSpec((T, E), lambda i: (i, 0)),
            ],
            out_specs=(
                pl.BlockSpec((T, 8), lambda i: (i, 0)),
                pl.BlockSpec((1, E), lambda i: (0, 0)),
                pl.BlockSpec((1, E), lambda i: (0, 0)),
            ),
            scratch_shapes=[pltpu.VMEM((1, E), jnp.float32)],
        ),
        compiler_params=pltpu.CompilerParams(
            dimension_semantics=("arbitrary",),
            vmem_limit_bytes=_VMEM_LIMIT,
        ),
        cost_estimate=pl.CostEstimate(
            flops=int(2 * S * D * E + 4 * S * T * E),
            transcendentals=int(S * E),
            bytes_accessed=int(x.size * x.dtype.itemsize
                               + weight.size * weight.dtype.itemsize
                               + noise.size * noise.dtype.itemsize
                               + S * 8 * 4),
        ),
    )(x, weight, noise)

    # ---- pass 2: expand to dense combine/dispatch (parallel over tokens) ----
    combine_flat, disp_i8 = pl.pallas_call(
        functools.partial(_phase2_kernel, C, E),
        out_shape=(
            jax.ShapeDtypeStruct((S, EC), out_dtype),
            jax.ShapeDtypeStruct((S, EC), jnp.int8),
        ),
        grid_spec=pltpu.PrefetchScalarGridSpec(
            num_scalar_prefetch=0,
            grid=(n_tiles,),
            in_specs=[
                pl.BlockSpec((T, 8), lambda i: (i, 0)),
                pl.BlockSpec((1, E), lambda i: (0, 0)),
            ],
            out_specs=(
                pl.BlockSpec((T, EC), lambda i: (i, 0)),
                pl.BlockSpec((T, EC), lambda i: (i, 0)),
            ),
        ),
        compiler_params=pltpu.CompilerParams(
            dimension_semantics=("parallel",),
            vmem_limit_bytes=_VMEM_LIMIT,
        ),
        cost_estimate=pl.CostEstimate(
            flops=int(10 * S * EC),
            transcendentals=0,
            bytes_accessed=int(S * EC * (jnp.dtype(out_dtype).itemsize + 1) + S * 8 * 4),
        ),
    )(meta, counts1)

    # l_aux = mean_e( mean_s(gates) * mean_s(mask1) )  -- tiny (1,E) math
    l_aux = jnp.mean((sum_gates / S) * (counts1 / S)).astype(x.dtype)
    combine_weights = combine_flat.reshape(S, E, C)      # metadata-only reshape
    dispatch_mask = disp_i8.reshape(S, E, C).astype(jnp.bool_)
    return l_aux, combine_weights, dispatch_mask


def _reference(x, weight, noise):
    """Pure-JAX mirror of torch top2gating (for toy-size validation)."""
    logits = jnp.dot(x.astype(jnp.float32), weight.T.astype(jnp.float32))
    gates = jax.nn.softmax(logits, axis=1)
    S, E = gates.shape
    C = 2 * S // E
    idx1 = jnp.argmax(gates, axis=1)
    mask1 = jax.nn.one_hot(idx1, E, dtype=jnp.float32)
    masked = jnp.where(mask1 > 0, -jnp.inf, logits + noise)
    idx2 = jnp.argmax(masked, axis=1)
    mask2 = jax.nn.one_hot(idx2, E, dtype=jnp.float32)
    loc1 = jnp.cumsum(mask1, axis=0) - 1.0
    loc2 = jnp.cumsum(mask2, axis=0) - 1.0 + jnp.sum(mask1, axis=0, keepdims=True)
    l_aux = jnp.mean(jnp.mean(gates, axis=0) * jnp.mean(mask1, axis=0))
    mask1 = mask1 * (loc1 < C)
    mask2 = mask2 * (loc2 < C)
    loc1_s = jnp.sum(loc1 * mask1, axis=1)
    loc2_s = jnp.sum(loc2 * mask2, axis=1)
    g1 = jnp.sum(gates * mask1, axis=1)
    g2 = jnp.sum(gates * mask2, axis=1)
    denom = jnp.maximum(g1 + g2, jnp.finfo(jnp.float32).eps)
    g1, g2 = g1 / denom, g2 / denom
    gates1 = g1[:, None] * mask1
    gates2 = g2[:, None] * mask2
    sc1 = jax.nn.one_hot(loc1_s.astype(jnp.int32), C, dtype=jnp.float32)
    sc2 = jax.nn.one_hot(loc2_s.astype(jnp.int32), C, dtype=jnp.float32)
    combine = gates1[:, :, None] * sc1[:, None, :] + gates2[:, :, None] * sc2[:, None, :]
    return l_aux, combine, combine != 0


if __name__ == "__main__":
    # small shapes consistent with the module: 8 tokens, model_dim=32, 4 experts
    S, D, E = 8, 32, 4

    key = jax.random.PRNGKey(0)
    k_x, k_w, k_n = jax.random.split(key, 3)

    x = jax.random.normal(k_x, (S, D), dtype=jnp.float32)
    bound = 1.0 / (D ** 0.5)     # nn.Linear(model_dim, num_experts, bias=False) init
    weight = jax.random.uniform(k_w, (E, D), minval=-bound, maxval=bound,
                                dtype=jnp.float32)
    noise = jax.random.gumbel(k_n, (S, E), dtype=jnp.float32)

    out = weight_top2gate_forward(x, weight, noise)
    l_aux, combine_weights, dispatch_mask = jax.block_until_ready(out)

    C = 2 * S // E
    assert combine_weights.shape == (S, E, C)
    assert dispatch_mask.shape == (S, E, C)
    assert dispatch_mask.dtype == jnp.bool_

    # toy-size correctness check against a pure-JAX reference
    ref_laux, ref_combine, ref_disp = _reference(x, weight, noise)
    np.testing.assert_allclose(np.asarray(combine_weights), np.asarray(ref_combine),
                               rtol=1e-3, atol=1e-4)
    np.testing.assert_allclose(float(l_aux), float(ref_laux), rtol=5e-2, atol=1e-6)
    assert bool(jnp.array_equal(dispatch_mask, ref_disp))

    print("KERNEL_OK")
</pallas_src>

<mosaic_0001>
module attributes {stable_mosaic.version = 11 : i64} {
  func.func @_phase1_kernel(%arg0: i32, %arg1: memref<8x32xf32, #tpu.memory_space<vmem>>, %arg2: memref<4x32xf32, #tpu.memory_space<vmem>>, %arg3: memref<8x4xf32, #tpu.memory_space<vmem>>, %arg4: memref<8x8xf32, #tpu.memory_space<vmem>>, %arg5: memref<1x4xf32, #tpu.memory_space<vmem>>, %arg6: memref<1x4xf32, #tpu.memory_space<vmem>>, %arg7: memref<1x4xf32, #tpu.memory_space<vmem>>) attributes {dimension_semantics = [#tpu.dimension_semantics<arbitrary>], iteration_bounds = array<i64: 1>, scalar_prefetch = 0 : i64, scratch_operands = 1 : i64, tpu.core_type = #tpu.core_type<tc>, window_params = [{transform_indices = @transform_0, window_bounds = array<i64: 8, 32>}, {pipeline_mode = #tpu.pipeline_mode<synchronous>, transform_indices = @transform_1, window_bounds = array<i64: 4, 32>}, {transform_indices = @transform_2, window_bounds = array<i64: 8, 4>}, {transform_indices = @transform_3, window_bounds = array<i64: 8, 8>}, {pipeline_mode = #tpu.pipeline_mode<synchronous>, transform_indices = @transform_4, window_bounds = array<i64: 1, 4>}, {pipeline_mode = #tpu.pipeline_mode<synchronous>, transform_indices = @transform_5, window_bounds = array<i64: 1, 4>}]} {
    %c0_i32 = arith.constant 0 : i32
    %0 = arith.cmpi eq, %arg0, %c0_i32 : i32
    %1 = arith.extui %0 : i1 to i32
    %c0_i32_0 = arith.constant 0 : i32
    %2 = arith.cmpi ne, %1, %c0_i32_0 : i32
    scf.if %2 {
      %cst_48 = arith.constant 0.000000e+00 : f32
      %134 = vector.broadcast %cst_48 : f32 to vector<1x4xf32>
      %c0_49 = arith.constant 0 : index
      %c0_50 = arith.constant 0 : index
      %135 = vector.load %arg5[%c0_49, %c0_50] : memref<1x4xf32, #tpu.memory_space<vmem>>, vector<1x4xf32>
      tpu.vector_store %arg5[%c0_49, %c0_50], %134 {strides = array<i32>} : memref<1x4xf32, #tpu.memory_space<vmem>>, vector<1x4xf32>,
      %cst_51 = arith.constant 0.000000e+00 : f32
      %136 = vector.broadcast %cst_51 : f32 to vector<1x4xf32>
      %c0_52 = arith.constant 0 : index
      %c0_53 = arith.constant 0 : index
      %137 = vector.load %arg6[%c0_52, %c0_53] : memref<1x4xf32, #tpu.memory_space<vmem>>, vector<1x4xf32>
      tpu.vector_store %arg6[%c0_52, %c0_53], %136 {strides = array<i32>} : memref<1x4xf32, #tpu.memory_space<vmem>>, vector<1x4xf32>,
      %cst_54 = arith.constant 0.000000e+00 : f32
      %138 = vector.broadcast %cst_54 : f32 to vector<1x4xf32>
      %c0_55 = arith.constant 0 : index
      %c0_56 = arith.constant 0 : index
      %139 = vector.load %arg7[%c0_55, %c0_56] : memref<1x4xf32, #tpu.memory_space<vmem>>, vector<1x4xf32>
      tpu.vector_store %arg7[%c0_55, %c0_56], %138 {strides = array<i32>} : memref<1x4xf32, #tpu.memory_space<vmem>>, vector<1x4xf32>,
    } else {
    }
    %c0 = arith.constant 0 : index
    %c0_1 = arith.constant 0 : index
    %3 = vector.load %arg1[%c0, %c0_1] : memref<8x32xf32, #tpu.memory_space<vmem>>, vector<8x32xf32>
    %c0_2 = arith.constant 0 : index
    %c0_3 = arith.constant 0 : index
    %4 = vector.load %arg2[%c0_2, %c0_3] : memref<4x32xf32, #tpu.memory_space<vmem>>, vector<4x32xf32>
    %cst = arith.constant dense<0.000000e+00> : vector<8x4xf32>
    %5 = tpu.matmul %3, %4, %cst {dimension_numbers = #tpu.dot_dimension_numbers<[1], [1], [0], [0], [0, 0, 1, 0], [], []>} : vector<8x32xf32>, vector<4x32xf32>, vector<8x4xf32> -> vector<8x4xf32>
    %cst_4 = arith.constant dense<0xFF800000> : vector<8xf32>
    %6 = vector.multi_reduction <maximumf>, %5, %cst_4 [1] : vector<8x4xf32> to vector<8xf32>
    %7 = vector.shape_cast %6 : vector<8xf32> to vector<8x1xf32>
    %8 = vector.broadcast %7 : vector<8x1xf32> to vector<8x4xf32>
    %9 = arith.subf %5, %8 : vector<8x4xf32>
    %10 = math.exp %9 : vector<8x4xf32>
    %cst_5 = arith.constant dense<0.000000e+00> : vector<8xf32>
    %11 = vector.multi_reduction <add>, %10, %cst_5 [1] : vector<8x4xf32> to vector<8xf32>
    %12 = vector.shape_cast %11 : vector<8xf32> to vector<8x1xf32>
    %13 = tpu.reciprocal %12 {approx = true} : vector<8x1xf32> -> vector<8x1xf32>
    %14 = vector.broadcast %13 : vector<8x1xf32> to vector<8x4xf32>
    %15 = arith.mulf %10, %14 : vector<8x4xf32>
    %16 = tpu.iota {dimensions = array<i32: 1>} : vector<8x4xi32>
    %cst_6 = arith.constant dense<0xFF800000> : vector<8xf32>
    %17 = vector.multi_reduction <maximumf>, %15, %cst_6 [1] : vector<8x4xf32> to vector<8xf32>
    %18 = vector.shape_cast %17 : vector<8xf32> to vector<8x1xf32>
    %19 = vector.broadcast %18 : vector<8x1xf32> to vector<8x4xf32>
    %20 = arith.cmpf oeq, %15, %19 : vector<8x4xf32>
    %c4_i32 = arith.constant 4 : i32
    %21 = vector.broadcast %c4_i32 : i32 to vector<8x4xi32>
    %22 = arith.select %20, %16, %21 : vector<8x4xi1>, vector<8x4xi32>
    %cst_7 = arith.constant dense<2147483647> : vector<8xi32>
    %23 = vector.multi_reduction <minsi>, %22, %cst_7 [1] : vector<8x4xi32> to vector<8xi32>
    %24 = vector.shape_cast %23 : vector<8xi32> to vector<8x1xi32>
    %25 = vector.broadcast %24 : vector<8x1xi32> to vector<8x4xi32>
    %26 = arith.cmpi eq, %16, %25 : vector<8x4xi32>
    %27 = arith.extui %26 : vector<8x4xi1> to vector<8x4xi32>
    %28 = arith.sitofp %27 : vector<8x4xi32> to vector<8x4xf32>
    %c0_8 = arith.constant 0 : index
    %c0_9 = arith.constant 0 : index
    %29 = vector.load %arg3[%c0_8, %c0_9] : memref<8x4xf32, #tpu.memory_space<vmem>>, vector<8x4xf32>
    %30 = arith.addf %5, %29 : vector<8x4xf32>
    %cst_10 = arith.constant 0.000000e+00 : f32
    %31 = vector.broadcast %cst_10 : f32 to vector<8x4xf32>
    %32 = arith.cmpf ogt, %28, %31 : vector<8x4xf32>
    %cst_11 = arith.constant -1.000000e+30 : f32
    %33 = vector.broadcast %cst_11 : f32 to vector<8x4xf32>
    %34 = arith.select %32, %33, %30 : vector<8x4xi1>, vector<8x4xf32>
    %cst_12 = arith.constant dense<0xFF800000> : vector<8xf32>
    %35 = vector.multi_reduction <maximumf>, %34, %cst_12 [1] : vector<8x4xf32> to vector<8xf32>
    %36 = vector.shape_cast %35 : vector<8xf32> to vector<8x1xf32>
    %37 = vector.broadcast %36 : vector<8x1xf32> to vector<8x4xf32>
    %38 = arith.cmpf oeq, %34, %37 : vector<8x4xf32>
    %c4_i32_13 = arith.constant 4 : i32
    %39 = vector.broadcast %c4_i32_13 : i32 to vector<8x4xi32>
    %40 = arith.select %38, %16, %39 : vector<8x4xi1>, vector<8x4xi32>
    %cst_14 = arith.constant dense<2147483647> : vector<8xi32>
    %41 = vector.multi_reduction <minsi>, %40, %cst_14 [1] : vector<8x4xi32> to vector<8xi32>
    %42 = vector.shape_cast %41 : vector<8xi32> to vector<8x1xi32>
    %43 = vector.broadcast %42 : vector<8x1xi32> to vector<8x4xi32>
    %44 = arith.cmpi eq, %16, %43 : vector<8x4xi32>
    %45 = arith.extui %44 : vector<8x4xi1> to vector<8x4xi32>
    %46 = arith.sitofp %45 : vector<8x4xi32> to vector<8x4xf32>
    %47 = tpu.iota {dimensions = array<i32: 0>} : vector<8x8xi32>
    %48 = tpu.iota {dimensions = array<i32: 1>} : vector<8x8xi32>
    %49 = arith.cmpi sle, %48, %47 : vector<8x8xi32>
    %50 = arith.extui %49 : vector<8x8xi1> to vector<8x8xi32>
    %51 = arith.sitofp %50 : vector<8x8xi32> to vector<8x8xf32>
    %cst_15 = arith.constant dense<0.000000e+00> : vector<8x4xf32>
    %52 = tpu.matmul %51, %28, %cst_15 {dimension_numbers = #tpu.dot_dimension_numbers<[1], [0], [0], [1], [0, 0, 1, 1], [], []>} : vector<8x8xf32>, vector<8x4xf32>, vector<8x4xf32> -> vector<8x4xf32>
    %cst_16 = arith.constant dense<0.000000e+00> : vector<8x4xf32>
    %53 = tpu.matmul %51, %46, %cst_16 {dimension_numbers = #tpu.dot_dimension_numbers<[1], [0], [0], [1], [0, 0, 1, 1], [], []>} : vector<8x8xf32>, vector<8x4xf32>, vector<8x4xf32> -> vector<8x4xf32>
    %c0_17 = arith.constant 0 : index
    %c0_18 = arith.constant 0 : index
    %54 = vector.load %arg5[%c0_17, %c0_18] : memref<1x4xf32, #tpu.memory_space<vmem>>, vector<1x4xf32>
    %c0_19 = arith.constant 0 : index
    %c0_20 = arith.constant 0 : index
    %55 = vector.load %arg7[%c0_19, %c0_20] : memref<1x4xf32, #tpu.memory_space<vmem>>, vector<1x4xf32>
    %56 = vector.broadcast %54 : vector<1x4xf32> to vector<8x4xf32>
    %57 = arith.addf %52, %56 : vector<8x4xf32>
    %cst_21 = arith.constant 1.000000e+00 : f32
    %58 = vector.broadcast %cst_21 : f32 to vector<8x4xf32>
    %59 = arith.subf %57, %58 : vector<8x4xf32>
    %60 = vector.broadcast %55 : vector<1x4xf32> to vector<8x4xf32>
    %61 = arith.addf %53, %60 : vector<8x4xf32>
    %cst_22 = arith.constant 1.000000e+00 : f32
    %62 = vector.broadcast %cst_22 : f32 to vector<8x4xf32>
    %63 = arith.subf %61, %62 : vector<8x4xf32>
    %cst_23 = arith.constant dense<0.000000e+00> : vector<4xf32>
    %64 = vector.multi_reduction <add>, %28, %cst_23 [0] : vector<8x4xf32> to vector<4xf32>
    %65 = vector.shape_cast %64 : vector<4xf32> to vector<1x4xf32>
    %66 = arith.addf %54, %65 : vector<1x4xf32>
    %c0_24 = arith.constant 0 : index
    %c0_25 = arith.constant 0 : index
    %67 = vector.load %arg5[%c0_24, %c0_25] : memref<1x4xf32, #tpu.memory_space<vmem>>, vector<1x4xf32>
    tpu.vector_store %arg5[%c0_24, %c0_25], %66 {strides = array<i32>} : memref<1x4xf32, #tpu.memory_space<vmem>>, vector<1x4xf32>,
    %cst_26 = arith.constant dense<0.000000e+00> : vector<4xf32>
    %68 = vector.multi_reduction <add>, %46, %cst_26 [0] : vector<8x4xf32> to vector<4xf32>
    %69 = vector.shape_cast %68 : vector<4xf32> to vector<1x4xf32>
    %70 = arith.addf %55, %69 : vector<1x4xf32>
    %c0_27 = arith.constant 0 : index
    %c0_28 = arith.constant 0 : index
    %71 = vector.load %arg7[%c0_27, %c0_28] : memref<1x4xf32, #tpu.memory_space<vmem>>, vector<1x4xf32>
    tpu.vector_store %arg7[%c0_27, %c0_28], %70 {strides = array<i32>} : memref<1x4xf32, #tpu.memory_space<vmem>>, vector<1x4xf32>,
    %c0_29 = arith.constant 0 : index
    %c0_30 = arith.constant 0 : index
    %72 = vector.load %arg6[%c0_29, %c0_30] : memref<1x4xf32, #tpu.memory_space<vmem>>, vector<1x4xf32>
    %cst_31 = arith.constant dense<0.000000e+00> : vector<4xf32>
    %73 = vector.multi_reduction <add>, %15, %cst_31 [0] : vector<8x4xf32> to vector<4xf32>
    %74 = vector.shape_cast %73 : vector<4xf32> to vector<1x4xf32>
    %75 = arith.addf %72, %74 : vector<1x4xf32>
    %c0_32 = arith.constant 0 : index
    %c0_33 = arith.constant 0 : index
    %76 = vector.load %arg6[%c0_32, %c0_33] : memref<1x4xf32, #tpu.memory_space<vmem>>, vector<1x4xf32>
    tpu.vector_store %arg6[%c0_32, %c0_33], %75 {strides = array<i32>} : memref<1x4xf32, #tpu.memory_space<vmem>>, vector<1x4xf32>,
    %77 = arith.mulf %15, %28 : vector<8x4xf32>
    %cst_34 = arith.constant dense<0.000000e+00> : vector<8xf32>
    %78 = vector.multi_reduction <add>, %77, %cst_34 [1] : vector<8x4xf32> to vector<8xf32>
    %79 = vector.shape_cast %78 : vector<8xf32> to vector<8x1xf32>
    %80 = arith.mulf %15, %46 : vector<8x4xf32>
    %cst_35 = arith.constant dense<0.000000e+00> : vector<8xf32>
    %81 = vector.multi_reduction <add>, %80, %cst_35 [1] : vector<8x4xf32> to vector<8xf32>
    %82 = vector.shape_cast %81 : vector<8xf32> to vector<8x1xf32>
    %83 = arith.mulf %59, %28 : vector<8x4xf32>
    %cst_36 = arith.constant dense<0.000000e+00> : vector<8xf32>
    %84 = vector.multi_reduction <add>, %83, %cst_36 [1] : vector<8x4xf32> to vector<8xf32>
    %85 = vector.shape_cast %84 : vector<8xf32> to vector<8x1xf32>
    %86 = arith.mulf %63, %46 : vector<8x4xf32>
    %cst_37 = arith.constant dense<0.000000e+00> : vector<8xf32>
    %87 = vector.multi_reduction <add>, %86, %cst_37 [1] : vector<8x4xf32> to vector<8xf32>
    %88 = vector.shape_cast %87 : vector<8xf32> to vector<8x1xf32>
    %89 = tpu.iota {dimensions = array<i32: 1>} : vector<8x8xi32>
    %c0_i32_38 = arith.constant 0 : i32
    %90 = vector.broadcast %c0_i32_38 : i32 to vector<8x8xi32>
    %91 = arith.cmpi eq, %89, %90 : vector<8x8xi32>
    %cst_39 = arith.constant 0.000000e+00 : f32
    %92 = vector.shape_cast %79 : vector<8x1xf32> to vector<8x1xf32>
    %93 = vector.broadcast %92 : vector<8x1xf32> to vector<8x8xf32>
    %94 = vector.broadcast %cst_39 : f32 to vector<8x8xf32>
    %95 = arith.select %91, %93, %94 : vector<8x8xi1>, vector<8x8xf32>
    %c1_i32 = arith.constant 1 : i32
    %96 = vector.broadcast %c1_i32 : i32 to vector<8x8xi32>
    %97 = arith.cmpi eq, %89, %96 : vector<8x8xi32>
    %cst_40 = arith.constant 0.000000e+00 : f32
    %98 = vector.shape_cast %82 : vector<8x1xf32> to vector<8x1xf32>
    %99 = vector.broadcast %98 : vector<8x1xf32> to vector<8x8xf32>
    %100 = vector.broadcast %cst_40 : f32 to vector<8x8xf32>
    %101 = arith.select %97, %99, %100 : vector<8x8xi1>, vector<8x8xf32>
    %102 = arith.addf %95, %101 : vector<8x8xf32>
    %c2_i32 = arith.constant 2 : i32
    %103 = vector.broadcast %c2_i32 : i32 to vector<8x8xi32>
    %104 = arith.cmpi eq, %89, %103 : vector<8x8xi32>
    %105 = arith.sitofp %24 : vector<8x1xi32> to vector<8x1xf32>
    %cst_41 = arith.constant 0.000000e+00 : f32
    %106 = vector.shape_cast %105 : vector<8x1xf32> to vector<8x1xf32>
    %107 = vector.broadcast %106 : vector<8x1xf32> to vector<8x8xf32>
    %108 = vector.broadcast %cst_41 : f32 to vector<8x8xf32>
    %109 = arith.select %104, %107, %108 : vector<8x8xi1>, vector<8x8xf32>
    %110 = arith.addf %102, %109 : vector<8x8xf32>
    %c3_i32 = arith.constant 3 : i32
    %111 = vector.broadcast %c3_i32 : i32 to vector<8x8xi32>
    %112 = arith.cmpi eq, %89, %111 : vector<8x8xi32>
    %113 = arith.sitofp %42 : vector<8x1xi32> to vector<8x1xf32>
    %cst_42 = arith.constant 0.000000e+00 : f32
    %114 = vector.shape_cast %113 : vector<8x1xf32> to vector<8x1xf32>
    %115 = vector.broadcast %114 : vector<8x1xf32> to vector<8x8xf32>
    %116 = vector.broadcast %cst_42 : f32 to vector<8x8xf32>
    %117 = arith.select %112, %115, %116 : vector<8x8xi1>, vector<8x8xf32>
    %118 = arith.addf %110, %117 : vector<8x8xf32>
    %c4_i32_43 = arith.constant 4 : i32
    %119 = vector.broadcast %c4_i32_43 : i32 to vector<8x8xi32>
    %120 = arith.cmpi eq, %89, %119 : vector<8x8xi32>
    %cst_44 = arith.constant 0.000000e+00 : f32
    %121 = vector.shape_cast %85 : vector<8x1xf32> to vector<8x1xf32>
    %122 = vector.broadcast %121 : vector<8x1xf32> to vector<8x8xf32>
    %123 = vector.broadcast %cst_44 : f32 to vector<8x8xf32>
    %124 = arith.select %120, %122, %123 : vector<8x8xi1>, vector<8x8xf32>
    %125 = arith.addf %118, %124 : vector<8x8xf32>
    %c5_i32 = arith.constant 5 : i32
    %126 = vector.broadcast %c5_i32 : i32 to vector<8x8xi32>
    %127 = arith.cmpi eq, %89, %126 : vector<8x8xi32>
    %cst_45 = arith.constant 0.000000e+00 : f32
    %128 = vector.shape_cast %88 : vector<8x1xf32> to vector<8x1xf32>
    %129 = vector.broadcast %128 : vector<8x1xf32> to vector<8x8xf32>
    %130 = vector.broadcast %cst_45 : f32 to vector<8x8xf32>
    %131 = arith.select %127, %129, %130 : vector<8x8xi1>, vector<8x8xf32>
    %132 = arith.addf %125, %131 : vector<8x8xf32>
    %c0_46 = arith.constant 0 : index
    %c0_47 = arith.constant 0 : index
    %133 = vector.load %arg4[%c0_46, %c0_47] : memref<8x8xf32, #tpu.memory_space<vmem>>, vector<8x8xf32>
    tpu.vector_store %arg4[%c0_46, %c0_47], %132 {strides = array<i32>} : memref<8x8xf32, #tpu.memory_space<vmem>>, vector<8x8xf32>,
    return
  }
  func.func @transform_0(%arg0: i32) -> (i32, i32) {
    %c0_i32 = arith.constant 0 : i32
    %c0_i32_0 = arith.constant 0 : i32
    return %arg0, %c0_i32 : i32, i32
  }
  func.func @transform_1(%arg0: i32) -> (i32, i32) {
    %c0_i32 = arith.constant 0 : i32
    %c0_i32_0 = arith.constant 0 : i32
    %c0_i32_1 = arith.constant 0 : i32
    return %c0_i32, %c0_i32_0 : i32, i32
  }
  func.func @transform_2(%arg0: i32) -> (i32, i32) {
    %c0_i32 = arith.constant 0 : i32
    %c0_i32_0 = arith.constant 0 : i32
    return %arg0, %c0_i32 : i32, i32
  }
  func.func @transform_3(%arg0: i32) -> (i32, i32) {
    %c0_i32 = arith.constant 0 : i32
    %c0_i32_0 = arith.constant 0 : i32
    return %arg0, %c0_i32 : i32, i32
  }
  func.func @transform_4(%arg0: i32) -> (i32, i32) {
    %c0_i32 = arith.constant 0 : i32
    %c0_i32_0 = arith.constant 0 : i32
    %c0_i32_1 = arith.constant 0 : i32
    return %c0_i32, %c0_i32_0 : i32, i32
  }
  func.func @transform_5(%arg0: i32) -> (i32, i32) {
    %c0_i32 = arith.constant 0 : i32
    %c0_i32_0 = arith.constant 0 : i32
    %c0_i32_1 = arith.constant 0 : i32
    return %c0_i32, %c0_i32_0 : i32, i32
  }
}

</mosaic_0001>

<bundles_post_ra>
// kernel: tpu_custom_call.1
= control target key start
LH: loop header
LB: loop body
LE: loop exit
PB: predicated region body
PF: predicated region fallthrough
CT: control target
= control target key end

     0   :  { %11 = vsyncpa [#allocation4], 0  ;;  %s839_s0 = inlined_call_operand.hbm [shape: f32[8,32], index: 0, kind: input, shape index: {}]   ;;  %s840_s1 = inlined_call_operand.hbm [shape: f32[4,32], index: 1, kind: input, shape index: {}]   ;;  %s841_s2 = inlined_call_operand.hbm [shape: f32[8,4], index: 2, kind: input, shape index: {}]   ;;  %s842_s3 = inlined_call_operand.hbm [shape: f32[8,8], index: 3, kind: output, shape index: {0}]   ;;  %s843_s4 = inlined_call_operand.hbm [shape: f32[1,4], index: 4, kind: output, shape index: {1}]   ;;  %s844_s5 = inlined_call_operand.hbm [shape: f32[1,4], index: 5, kind: output, shape index: {2}]  }
   0x1   :  { %12 = vsyncpa [#allocation7], 0 }
   0x2   :  { %13 = vsyncpa [#allocation5], 0 }
   0x3   :  { %14 = vsyncpa [#allocation11], 0  ;;  %s663_s18 = smov [#allocation6]   ;;  %s664_s20 = smov [#allocation3]  }
   0x4   :  { %s31_s19 = sshll.u32 %s663_s18, 4  ;;  %s21_s21 = sshll.u32 %s664_s20, 4  ;;  %s32_s19 = int_to_ptr.vmem [resolvable:$true] %s31_s19  ;;  %s22_s21 = int_to_ptr.vmem [resolvable:$true] %s21_s21 }
   0x5   :  { %s523_s24 = scalar_lea.hbm %s840_s1, 64 }
   0x6   :  { %p524_p0 = scmp.ne.s32.totalorder %s840_s1, %s523_s24  ;;  %p527_p1 = scmp.lt.u32.totalorder %s523_s24, %s840_s1 }
   0x8   :  { %p529_p2 = pnand %p527_p1, %p524_p0 }
   0xa   :  { %532 = shalt.err (!%p529_p2)
}
   0xb   :  { %s533_s29 = scalar_lea.vmem %s32_s19, 64  ;;  %p538_p4 = scmp.lt.s32.totalorder %s32_s19, %s32_s19 }
   0xc   :  { %p534_p3 = scmp.ne.s32.totalorder %s32_s19, %s533_s29  ;;  %p539_p5 = scmp.lt.s32.totalorder %s533_s29, %s533_s29 }
   0xe   :  { %p540_p6 = por %p539_p5, %p538_p4 }
  0x10   :  { %p541_p7 = pnand %p540_p6, %p534_p3 }
  0x12   :  { %544 = shalt.err (!%p541_p7)
}
  0x13   :  { %34 = dma.hbm_to_vmem [thread:$0]  %s840_s1, 64, %s32_s19, [#allocation7]  }
  0x14   :  { %s545_s9 = scalar_lea.hbm %s839_s0, 128 }
  0x15   :  { %p546_p8 = scmp.ne.s32.totalorder %s839_s0, %s545_s9  ;;  %p549_p9 = scmp.lt.u32.totalorder %s545_s9, %s839_s0 }
  0x17   :  { %p551_p10 = pnand %p549_p9, %p546_p8 }
  0x19   :  { %554 = shalt.err (!%p551_p10)
}
  0x1a   :  { %s555_s14 = scalar_lea.vmem %s22_s21, 128  ;;  %p560_p12 = scmp.lt.s32.totalorder %s22_s21, %s22_s21 }
  0x1b   :  { %p556_p11 = scmp.ne.s32.totalorder %s22_s21, %s555_s14  ;;  %p561_p13 = scmp.lt.s32.totalorder %s555_s14, %s555_s14 }
  0x1d   :  { %p562_p0 = por %p561_p13, %p560_p12 }
  0x1f   :  { %p563_p1 = pnand %p562_p0, %p556_p11 }
  0x21   :  { %566 = shalt.err (!%p563_p1)
}
  0x22   :  { %24 = dma.hbm_to_vmem [thread:$0]  %s839_s0, 128, %s22_s21, [#allocation4]  }
  0x23   :  { %s665_s16 = smov [#allocation8]   ;;  %s567_s20 = scalar_lea.hbm %s841_s2, 128 }
  0x24   :  { %s41_s17 = sshll.u32 %s665_s16, 4  ;;  %p568_p2 = scmp.ne.s32.totalorder %s841_s2, %s567_s20  ;;  %s42_s17 = int_to_ptr.vmem [resolvable:$true] %s41_s17 }
  0x25   :  { %p571_p3 = scmp.lt.u32.totalorder %s567_s20, %s841_s2 }
  0x27   :  { %p573_p4 = pnand %p571_p3, %p568_p2 }
  0x29   :  { %576 = shalt.err (!%p573_p4)
}
  0x2a   :  { %s577_s26 = scalar_lea.vmem %s42_s17, 128  ;;  %p582_p6 = scmp.lt.s32.totalorder %s42_s17, %s42_s17 }
  0x2b   :  { %p578_p5 = scmp.ne.s32.totalorder %s42_s17, %s577_s26  ;;  %p583_p7 = scmp.lt.s32.totalorder %s577_s26, %s577_s26 }
  0x2d   :  { %p584_p8 = por %p583_p7, %p582_p6 }
  0x2f   :  { %p585_p9 = pnand %p584_p8, %p578_p5 }
  0x31   :  { %588 = shalt.err (!%p585_p9)
}
  0x32   :  { %44 = dma.hbm_to_vmem [thread:$0]  %s841_s2, 128, %s42_s17, [#allocation7]  }
  0x33   :  { %655 = dma.done.wait [#allocation4], 128  }
  0x34   :  { %656 = vsyncadd [#allocation4], 4294967168 }
  0x35   :  { %657 = dma.done.wait [#allocation7], 192  }
  0x36   :  { %658 = vsyncadd [#allocation7], 4294967104  ;;  %v666_v0 = vmov 0.0   ;;  %vm667_vm0 = vmmov 0   ;;  %vm64_vm1 = vcmask 261120   ;;  %v62_v2 = vld [vmem:[#allocation3] sm:$0xff]  ;;  %v153_v24 = vlaneseq }
  0x37   :  { %495 = vmatprep.subr.mxu0 %v666_v0  ;;  %497 = vmatprep.mubr.msk.f32.mxu0 %vm667_vm0, %v666_v0  ;;  %v63_v1 = vld [vmem:[#allocation6] sm:$0xf]  ;;  %vm141_vm2 = vcmask 31744   ;;  %vm58_vm3 = vcmask 24576   ;;  %v178_v41 = vld [vmem:[#allocation8] sm:$0xff]  ;;  %vm218_vm7 = vcmask 64512  }
  0x38   :  { %500 = vmatprep.subr.mxu1 %v666_v0  ;;  %502 = vmatprep.mubr.msk.f32.mxu1 %vm667_vm0, %v666_v0  ;;  %59 = vst.msk [vmem:[#allocation10] sm:$0x1] %vm58_vm3, %v666_v0  ;;  %60 = vst.msk [vmem:[#allocation12] sm:$0x1] %vm58_vm3, %v666_v0  ;;  %v759_v25 = vand.u32 127, %v153_v24  ;;  %v764_v36 = vshrl.u32 %v153_v24, 7 }
  0x39   :  { %496 = vmatpush3.xpose.msk.msra.mxu0 %vm64_vm1, %v63_v1  ;;  %61 = vst.msk [vmem:[#allocation2] sm:$0x1] %vm58_vm3, %v666_v0  ;;  %v668_v44 = vmov 1.0   ;;  %s669_s2 = smov [#allocation10]  }
  0x3a   :  { %vm207_vm6 = vcmp.le.s32.totalorder %v759_v25, %v764_v36  ;;  %v215_v1 = vsub.s32 0, %v764_v36  ;;  %vm415_vm13 = vcmp.eq.s32.totalorder %v759_v25, 0  ;;  %vm417_vm14 = vcmp.eq.s32.totalorder %v759_v25, 1  ;;  %s451_s27 = sshll.u32 %s669_s2, 4  ;;  %s452_s27 = int_to_ptr.vmem [resolvable:$true] %s451_s27 }
  0x3b   :  { %v482_v42 = vsel %vm207_vm6, 1.0, %v666_v0  ;;  %vm420_vm15 = vcmp.eq.s32.totalorder %v759_v25, 2  ;;  %s589_s28 = scalar_lea.vmem %s452_s27, 16  ;;  %s593_s29 = scalar_lea.vmem %s452_s27, 32 }
  0x3c   :  { %498 = vmatmul.mubr.msk.f32.vlgmr.msra.gmra.mrb[0].mxu0 %vm64_vm1, %v62_v2  ;;  %p590_p10 = scmp.ne.s32.totalorder %s452_s27, %s589_s28  ;;  %p594_p11 = scmp.lt.s32.totalorder %s452_s27, %s452_s27 }
  0x3d   :  { %p595_p12 = scmp.lt.s32.totalorder %s593_s29, %s589_s28 }
  0x3f   :  { %v389_v21 = vld [vmem:[#allocation12] sm:$0x1]  ;;  %v210_v54 = vld [vmem:[#allocation10] sm:$0x1]  ;;  %p596_p13 = por %p595_p12, %p594_p11 }
  0x40   :  { %v216_v2 = vrot.slane %v210_v54, %v215_v1 }
  0x41   :  { %p597_p0 = pnand %p596_p13, %p590_p10 }
 0x10f   :  { %v137_v3 = vpop.f32.mrb[0].mxu0 }
 0x110   :  { %v499_v4 = vpop.f32.mrb[1].mxu0  ;;  %v142_v5 = vsel %vm141_vm2, %v137_v3, -inf  ;;  %v179_v45 = vadd.f32 %v178_v41, %v137_v3 }
 0x111   :  { %143 = vmax.xlane.f32.xlu0 %v142_v5 }
 0x19e   :  { %v144_v6 = vpop.xlane.xlu0 %143 }
 0x19f   :  { %v145_v7 = vsub.f32 %v137_v3, %v144_v6 }
 0x1a1   :  { %v146_v8 = vmul.f32 1.442695, %v145_v7 }
 0x1a3   :  { %519 = vpow2.f32 %v146_v8 }
 0x1ad   :  { %v520_v9 = vpop.eup %519 }
 0x1ae   :  { %v148_v10 = vsel %vm141_vm2, %v520_v9, 0.0 }
 0x1af   :  { %149 = vadd.xlane.f32.xlu0 %v148_v10 }
 0x23c   :  { %v150_v11 = vpop.xlane.xlu0 %149 }
 0x23d   :  { %521 = vrcp.f32 %v150_v11 }
 0x247   :  { %v522_v12 = vpop.eup %521 }
 0x248   :  { %v752_v13 = vmul.f32 %v522_v12, %v520_v9 }
 0x24a   :  { %v155_v14 = vsel %vm141_vm2, %v752_v13, -inf  ;;  %v390_v15 = vsel %vm141_vm2, %v752_v13, 0.0 }
 0x24b   :  { %156 = vmax.xlane.f32.xlu1 %v155_v14  ;;  %v391_v16 = vrot.slane %v390_v15, 4 }
 0x24d   :  { %v392_v17 = vadd.f32 %v391_v16, %v390_v15 }
 0x24f   :  { %v393_v18 = vrot.slane %v392_v17, 2 }
 0x251   :  { %v394_v19 = vadd.f32 %v393_v18, %v392_v17 }
 0x253   :  { %v395_v20 = vrot.slane %v394_v19, 1 }
 0x255   :  { %v396_v22 = vadd.f32 %v395_v20, %v394_v19 }
 0x257   :  { %v397_v23 = vadd.f32 %v396_v22, %v389_v21 }
 0x259   :  { %398 = vst.msk [vmem:[#allocation12] sm:$0x1] %vm58_vm3, %v397_v23 }
 0x2d8   :  { %v157_v26 = vpop.xlane.xlu1 %156 }
 0x2d9   :  { %vm158_vm4 = vcmp.eq.f32.partialorder %v752_v13, %v157_v26 }
 0x2da   :  { %v159_v27 = vsel %vm158_vm4, %v759_v25, 4 }
 0x2db   :  { %v160_v28 = vsel %vm141_vm2, %v159_v27, 2147483647 }
 0x2dc   :  { %v162_v29 = vshra.s32 %v160_v28, 16  ;;  %v161_v31 = vand.u32 65535, %v160_v28 }
 0x2de   :  { %v164_v30 = vcvt.s32.f32 %v162_v29  ;;  %v163_v33 = vcvt.s32.f32 %v161_v31  ;;  %v211_v29 = vld [vmem:[#allocation2] sm:$0x1] }
 0x2e0   :  { %165 = vmin.xlane.f32.xlu1 %v164_v30 }
 0x36d   :  { %v166_v32 = vpop.xlane.xlu1 %165 }
 0x36e   :  { %vm167_vm5 = vcmp.eq.f32.partialorder %v164_v30, %v166_v32  ;;  %v172_v35 = vcvt.f32.s32 %v166_v32 }
 0x36f   :  { %v168_v34 = vsel %vm167_vm5, %v163_v33, inf }
 0x370   :  { %169 = vmin.xlane.f32.xlu0 %v168_v34  ;;  %v173_v38 = vshll.u32 %v172_v35, 16 }
 0x3fd   :  { %v170_v37 = vpop.xlane.xlu0 %169 }
 0x3fe   :  { %v171_v39 = vcvt.f32.s32 %v170_v37 }
 0x400   :  { %v768_v40 = vadd.s32 %v173_v38, %v171_v39 }
 0x402   :  { %vm175_vm8 = vcmp.eq.s32.totalorder %v759_v25, %v768_v40 }
 0x403   :  { %v480_v43 = vsel %vm175_vm8, 1.0, %v666_v0  ;;  %501 = vmatpush3.msk.msra.mxu1 %vm175_vm8, %v668_v44 }
 0x404   :  { %v370_v46 = vsel %vm141_vm2, %v480_v43, 0.0  ;;  %503 = vmatmul.mubr.msk.f32.vlgmr.msra.gmra.mrb[0].mxu1 %vm218_vm7, %v482_v42  ;;  %vm180_vm9 = vcmp.gt.f32.partialorder %v480_v43, 0.0  ;;  %505 = vmatprep.subr.mxu1 %v666_v0  ;;  %v399_v62 = vmul.f32 %v480_v43, %v752_v13 }
 0x405   :  { %v371_v47 = vrot.slane %v370_v46, 4  ;;  %v181_v48 = vsel %vm180_vm9, -1e+30, %v179_v45  ;;  %507 = vmatprep.mubr.msk.f32.mxu1 %vm667_vm0, %v666_v0  ;;  %vm424_vm0 = vcmp.eq.s32.totalorder %v759_v25, 3 }
 0x406   :  { %v182_v49 = vsel %vm141_vm2, %v181_v48, -inf  ;;  %v400_v63 = vsel %vm141_vm2, %v399_v62, 0.0 }
 0x407   :  { %v372_v50 = vadd.f32 %v371_v47, %v370_v46  ;;  %183 = vmax.xlane.f32.xlu1 %v182_v49 }
 0x409   :  { %v373_v51 = vrot.slane %v372_v50, 2 }
 0x40b   :  { %v374_v52 = vadd.f32 %v373_v51, %v372_v50 }
 0x40d   :  { %v375_v53 = vrot.slane %v374_v52, 1 }
 0x40f   :  { %v376_v55 = vadd.f32 %v375_v53, %v374_v52 }
 0x411   :  { %v377_v56 = vadd.f32 %v376_v55, %v210_v54 }
 0x413   :  { %379 = vst.msk [vmem:[#allocation10] sm:$0x1] %vm58_vm3, %v377_v56 }
 0x494   :  { %v184_v57 = vpop.xlane.xlu1 %183 }
 0x495   :  { %vm185_vm10 = vcmp.eq.f32.partialorder %v181_v48, %v184_v57 }
 0x496   :  { %v186_v58 = vsel %vm185_vm10, %v759_v25, 4 }
 0x497   :  { %v187_v59 = vsel %vm141_vm2, %v186_v58, 2147483647 }
 0x498   :  { %v189_v60 = vshra.s32 %v187_v59, 16  ;;  %v188_v9 = vand.u32 65535, %v187_v59 }
 0x49a   :  { %v191_v61 = vcvt.s32.f32 %v189_v60  ;;  %v190_v11 = vcvt.s32.f32 %v188_v9 }
 0x49c   :  { %192 = vmin.xlane.f32.xlu0 %v191_v61 }
 0x4a0   :  { %401 = vadd.xlane.f32.xlu0 %v400_v63 }
 0x4d7   :  { %v288_v3 = vpop.f32.mrb[0].mxu1 }
 0x4d8   :  { %v289_v4 = vadd.f32 %v288_v3, %v216_v2  ;;  %v504_v5 = vpop.f32.mrb[1].mxu1 }
 0x4da   :  { %v485_v6 = vadd.f32 -1.0, %v289_v4 }
 0x4dc   :  { %v407_v7 = vmul.f32 %v485_v6, %v480_v43 }
 0x4de   :  { %v408_v8 = vsel %vm141_vm2, %v407_v7, 0.0 }
 0x4df   :  { %409 = vadd.xlane.f32.xlu0 %v408_v8 }
 0x529   :  { %v193_v10 = vpop.xlane.xlu0 %192 }
 0x52a   :  { %vm194_vm11 = vcmp.eq.f32.partialorder %v191_v61, %v193_v10  ;;  %v199_v14 = vcvt.f32.s32 %v193_v10 }
 0x52b   :  { %v195_v12 = vsel %vm194_vm11, %v190_v11, inf }
 0x52c   :  { %196 = vmin.xlane.f32.xlu1 %v195_v12  ;;  %v200_v16 = vshll.u32 %v199_v14, 16 }
 0x5b9   :  { %v197_v15 = vpop.xlane.xlu1 %196 }
 0x5ba   :  { %v198_v17 = vcvt.f32.s32 %v197_v15 }
 0x5bc   :  { %v201_v18 = vadd.s32 %v200_v16, %v198_v17 }
 0x5be   :  { %vm202_vm12 = vcmp.eq.s32.totalorder %v759_v25, %v201_v18  ;;  %v425_v34 = vcvt.s32.f32 %v201_v18 }
 0x5bf   :  { %506 = vmatpush3.msk.msra.mxu1 %vm202_vm12, %v668_v44  ;;  %v481_v19 = vsel %vm202_vm12, 1.0, %v666_v0  ;;  %v402_v0 = vpop.xlane.xlu0 %401 }
 0x5c0   :  { %508 = vmatmul.mubr.msk.f32.vlgmr.msra.gmra.mrb[2].mxu1 %vm218_vm7, %v482_v42  ;;  %v403_v20 = vmul.f32 %v481_v19, %v752_v13  ;;  %v380_v21 = vsel %vm141_vm2, %v481_v19, 0.0  ;;  %v421_v13 = vcvt.s32.f32 %v768_v40  ;;  %v416_v33 = vsel %vm415_vm13, %v402_v0, 0.0 }
 0x5c1   :  { %v381_v22 = vrot.slane %v380_v21, 4  ;;  %v426_v39 = vsel %vm424_vm0, %v425_v34, 0.0  ;;  %v297_v42 = vrot.slane %v211_v29, %v215_v1 }
 0x5c2   :  { %v404_v23 = vsel %vm141_vm2, %v403_v20, 0.0  ;;  %v422_v37 = vsel %vm420_vm15, %v421_v13, 0.0 }
 0x5c3   :  { %405 = vadd.xlane.f32.xlu1 %v404_v23  ;;  %v382_v24 = vadd.f32 %v381_v22, %v380_v21 }
 0x5c5   :  { %v383_v26 = vrot.slane %v382_v24, 2 }
 0x5c7   :  { %v384_v27 = vadd.f32 %v383_v26, %v382_v24 }
 0x5c9   :  { %v385_v28 = vrot.slane %v384_v27, 1 }
 0x5cb   :  { %v386_v30 = vadd.f32 %v385_v28, %v384_v27 }
 0x5cd   :  { %v387_v31 = vadd.f32 %v386_v30, %v211_v29 }
 0x5cf   :  { %388 = vst.msk [vmem:[#allocation2] sm:$0x1] %vm58_vm3, %v387_v31 }
 0x650   :  { %v406_v32 = vpop.xlane.xlu1 %405 }
 0x651   :  { %v418_v35 = vsel %vm417_vm14, %v406_v32, 0.0 }
 0x652   :  { %v419_v36 = vadd.f32 %v418_v35, %v416_v33 }
 0x654   :  { %v423_v38 = vadd.f32 %v422_v37, %v419_v36 }
 0x656   :  { %v427_v41 = vadd.f32 %v426_v39, %v423_v38 }
 0x693   :  { %v365_v43 = vpop.f32.mrb[2].mxu1 }
 0x694   :  { %v366_v44 = vadd.f32 %v365_v43, %v297_v42  ;;  %v509_v45 = vpop.f32.mrb[3].mxu1 }
 0x696   :  { %v488_v46 = vadd.f32 -1.0, %v366_v44 }
 0x698   :  { %v411_v47 = vmul.f32 %v488_v46, %v481_v19 }
 0x69a   :  { %v412_v40 = vsel %vm141_vm2, %v411_v47, 0.0 }
 0x69b   :  { %413 = vadd.xlane.f32.xlu1 %v412_v40 }
 0x69c   :  { %600 = shalt.err (!%p597_p0)
}
 0x69d   :  { %s601_s7 = scalar_lea.hbm %s843_s4, 16 }
 0x69e   :  { %p602_p1 = scmp.ne.s32.totalorder %s843_s4, %s601_s7  ;;  %p605_p2 = scmp.lt.u32.totalorder %s601_s7, %s843_s4 }
 0x6a0   :  { %p607_p3 = pnand %p605_p2, %p602_p1 }
 0x6a2   :  { %610 = shalt.err (!%p607_p3)
}
 0x6a3   :  { %454 = dma.vmem_to_hbm [thread:$0]  %s452_s27, 16, %s843_s4, [#allocation11]  }
 0x6a4   :  { %s670_s14 = smov [#allocation12]  }
 0x6a5   :  { %s461_s1 = sshll.u32 %s670_s14, 4  ;;  %s462_s1 = int_to_ptr.vmem [resolvable:$true] %s461_s1 }
 0x6a6   :  { %s611_s15 = scalar_lea.vmem %s462_s1, 16  ;;  %s615_s16 = scalar_lea.vmem %s462_s1, 32 }
 0x6a7   :  { %p612_p4 = scmp.ne.s32.totalorder %s462_s1, %s611_s15  ;;  %p616_p5 = scmp.lt.s32.totalorder %s462_s1, %s462_s1 }
 0x6a8   :  { %p617_p6 = scmp.lt.s32.totalorder %s615_s16, %s611_s15 }
 0x6aa   :  { %p618_p7 = por %p617_p6, %p616_p5 }
 0x6ac   :  { %p619_p8 = pnand %p618_p7, %p612_p4 }
 0x6ae   :  { %622 = shalt.err (!%p619_p8)
}
 0x6af   :  { %s623_s19 = scalar_lea.hbm %s844_s5, 16 }
 0x6b0   :  { %p624_p9 = scmp.ne.s32.totalorder %s844_s5, %s623_s19  ;;  %p627_p10 = scmp.lt.u32.totalorder %s623_s19, %s844_s5 }
 0x6b2   :  { %p629_p11 = pnand %p627_p10, %p624_p9 }
 0x6b4   :  { %632 = shalt.err (!%p629_p11)
}
 0x6b5   :  { %464 = dma.vmem_to_hbm [thread:$0]  %s462_s1, 16, %s844_s5, [#allocation11]   ;;  %vm428_vm1 = vcmp.eq.s32.totalorder %v759_v25, 4  ;;  %v410_v48 = vpop.xlane.xlu0 %409  ;;  %vm431_vm2 = vcmp.eq.s32.totalorder %v759_v25, 5 }
 0x6b6   :  { %v429_v49 = vsel %vm428_vm1, %v410_v48, 0.0  ;;  %s671_s26 = smov [#allocation9]  }
 0x6b7   :  { %s441_s0 = sshll.u32 %s671_s26, 4  ;;  %v430_v51 = vadd.f32 %v429_v49, %v427_v41  ;;  %s442_s0 = int_to_ptr.vmem [resolvable:$true] %s441_s0 }
 0x6b8   :  { %s633_s21 = scalar_lea.vmem %s442_s0, 128  ;;  %p638_p13 = scmp.lt.s32.totalorder %s442_s0, %s442_s0 }
 0x6b9   :  { %p634_p12 = scmp.ne.s32.totalorder %s442_s0, %s633_s21  ;;  %p639_p0 = scmp.lt.s32.totalorder %s633_s21, %s633_s21 }
 0x6bb   :  { %p640_p1 = por %p639_p0, %p638_p13 }
 0x6bd   :  { %p641_p2 = pnand %p640_p1, %p634_p12 }
 0x728   :  { %v414_v50 = vpop.xlane.xlu1 %413 }
 0x729   :  { %v432_v52 = vsel %vm431_vm2, %v414_v50, 0.0 }
 0x72a   :  { %v433_v53 = vadd.f32 %v432_v52, %v430_v51 }
 0x72c   :  { %434 = vst.msk [vmem:[#allocation9] sm:$0xff] %vm218_vm7, %v433_v53 }
 0x72d   :  { %644 = shalt.err (!%p641_p2)
}
 0x72e   :  { %s645_s27 = scalar_lea.hbm %s842_s3, 128 }
 0x72f   :  { %p646_p3 = scmp.ne.s32.totalorder %s842_s3, %s645_s27  ;;  %p649_p4 = scmp.lt.u32.totalorder %s645_s27, %s842_s3 }
 0x731   :  { %p651_p5 = pnand %p649_p4, %p646_p3 }
 0x733   :  { %654 = shalt.err (!%p651_p5)
}
 0x734   :  { %444 = dma.vmem_to_hbm [thread:$0]  %s442_s0, 128, %s842_s3, [#allocation5]  }
 0x735   :  { %659 = dma.done.wait [#allocation5], 128  }
 0x736   :  { %660 = vsyncadd [#allocation5], 4294967168 }
 0x737   :  { %661 = dma.done.wait [#allocation11], 32  }
 0x738   :  { %662 = vsyncadd [#allocation11], 4294967264 }
 0x739   :  { %474 = vsyncpa [#allocation4], 1 }
 0x73a   :  { %475 = vsyncpa [#allocation7], 1 }
 0x73b   :  { %476 = vsyncpa [#allocation5], 1 }
 0x73c   :  { %477 = vsyncpa [#allocation11], 1 }

</bundles_post_ra>
